<compile_context>
chip_gen: v7x
topology: tpu7x:2x2x1
jax: 0.10.0
libtpu: 0.0.40
codegen_flags: <defaults>
</compile_context>

<pallas_src>
import functools

import jax
import jax.numpy as jnp
from jax.experimental import pallas as pl
from jax.experimental.pallas import tpu as pltpu


def _round_up(x, m):
    return (x + m - 1) // m * m


def _cdiv(a, b):
    return (a + b - 1) // b


def _ln_kernel_reduce(x_ref, alpha_ref, beta_ref, o_ref, *, eps, h):
    """Wide-feature path (no lane packing): per-row cross-lane (XLU) reductions."""
    x = x_ref[...].astype(jnp.float32)                          # (tm, H)
    mean = jnp.sum(x, axis=-1, keepdims=True) * (1.0 / h)       # (tm, 1)
    diff = x - mean
    var = jnp.sum(diff * diff, axis=-1, keepdims=True) * (1.0 / (h - 1))
    inv = pl.reciprocal(jnp.sqrt(var) + eps, approx=True)       # EUP
    alpha = alpha_ref[...].astype(jnp.float32)                  # (1, H)
    beta = beta_ref[...].astype(jnp.float32)                    # (1, H)
    o_ref[...] = ((diff * inv) * alpha + beta).astype(o_ref.dtype)


def _ln_kernel_packed(seg_ref, x_ref, alpha_ref, beta_ref, o_ref, *, eps, h):
    """Lane-packed path: each 128-lane row holds 128 // h independent logical rows.

    Segmented sums (per h-lane group) come from one matmul against a block-diagonal
    ones matrix; the group sum arrives already broadcast across each group, so the
    rest of the math is purely elementwise on the VPU.
    """
    x = x_ref[...].astype(jnp.float32)                          # (tm, W)
    seg = seg_ref[...]                                          # (W, W) block-diag ones
    mean = jnp.dot(x, seg, preferred_element_type=jnp.float32) * (1.0 / h)
    diff = x - mean
    var = jnp.dot(diff * diff, seg,
                  preferred_element_type=jnp.float32) * (1.0 / (h - 1))
    inv = pl.reciprocal(jnp.sqrt(var) + eps, approx=True)       # EUP
    alpha = alpha_ref[...].astype(jnp.float32)                  # (1, W)
    beta = beta_ref[...].astype(jnp.float32)                    # (1, W)
    o_ref[...] = ((diff * inv) * alpha + beta).astype(o_ref.dtype)


def layer_normalization(data, alpha, beta, eps, *, tm=2048):
    """data: (..., H); alpha, beta: (H,). Matches the PyTorch forward exactly."""
    orig_shape = data.shape
    h = orig_shape[-1]
    assert h > 1, "unbiased std needs at least 2 features"

    r = 1
    for d in orig_shape[:-1]:
        r *= d
    x2d = data.reshape(r, h)

    # Lane-dense packing for small feature dims (e.g. H=32 -> 4 rows per 128 lanes).
    pack = 128 // h if (h < 128 and 128 % h == 0) else 1
    w = h * pack

    # Row-tile sizing: multiple of 8 sublanes, capped so one block stays ~2 MiB.
    itembytes = jnp.dtype(data.dtype).itemsize
    tm = max(8, _round_up(int(tm), 8))
    tm_cap = max(8, ((2 * 1024 * 1024) // (w * itembytes)) // 8 * 8)
    tm = min(tm, tm_cap)

    rows = _cdiv(r, pack)                         # packed rows needed
    # Re-derive the tile so ragged row counts pad minimally (<= 7 rows per step).
    n_steps = max(1, _cdiv(rows, tm))
    tm_eff = min(tm, _round_up(_cdiv(rows, n_steps), 8))
    rows_padded = _round_up(rows, tm_eff)
    r_padded = rows_padded * pack
    if r_padded != r:
        # Padded zero rows produce finite values (mean=0, var=0 -> beta) and are
        # sliced off below.
        x2d = jnp.pad(x2d, ((0, r_padded - r), (0, 0)))
    xp = x2d.reshape(rows_padded, w)

    # Parameters tiled to the lane-dense width once in the wrapper (not per step).
    alpha2d = jnp.tile(alpha.reshape(1, h), (1, pack))
    beta2d = jnp.tile(beta.reshape(1, h), (1, pack))

    in_specs = []
    args = []
    if pack > 1:
        group = jnp.arange(w, dtype=jnp.int32) // h
        seg = (group[:, None] == group[None, :]).astype(jnp.float32)    # (W, W)
        kernel = functools.partial(_ln_kernel_packed, eps=float(eps), h=h)
        in_specs.append(pl.BlockSpec((w, w), lambda i: (0, 0)))
        args.append(seg)
    else:
        kernel = functools.partial(_ln_kernel_reduce, eps=float(eps), h=h)

    in_specs += [
        pl.BlockSpec((tm_eff, w), lambda i: (i, 0)),
        pl.BlockSpec((1, w), lambda i: (0, 0)),
        pl.BlockSpec((1, w), lambda i: (0, 0)),
    ]
    args += [xp, alpha2d, beta2d]

    out = pl.pallas_call(
        kernel,
        out_shape=jax.ShapeDtypeStruct((rows_padded, w), data.dtype),
        grid_spec=pltpu.PrefetchScalarGridSpec(
            num_scalar_prefetch=0,
            grid=(rows_padded // tm_eff,),
            in_specs=in_specs,
            out_specs=pl.BlockSpec((tm_eff, w), lambda i: (i, 0)),
        ),
        compiler_params=pltpu.CompilerParams(
            dimension_semantics=("parallel",),
            vmem_limit_bytes=32 * 1024 * 1024,
        ),
    )(*args)

    out2d = out.reshape(r_padded, h)[:r]
    return out2d.reshape(orig_shape)


def _ref_layernorm(x, alpha, beta, eps):
    h = x.shape[-1]
    mean = jnp.mean(x, axis=-1, keepdims=True)
    std = jnp.sqrt(jnp.sum((x - mean) ** 2, axis=-1, keepdims=True) / (h - 1))
    return alpha * (x - mean) / (std + eps) + beta


if __name__ == "__main__":
    # config equivalent: {'num_features': 32, 'eps': 1e-6}
    num_features = 32
    eps = 1e-6

    # deterministic parameter init (matches nn.Parameter(torch.ones(...)))
    alpha = jnp.ones((num_features,), dtype=jnp.float32)
    beta = jnp.ones((num_features,), dtype=jnp.float32)

    key = jax.random.PRNGKey(0)
    k1, k2, k3 = jax.random.split(key, 3)

    # main case: H=32 -> lane-packed path (4 logical rows per 128-lane row)
    x = jax.random.normal(k1, (2, 8, num_features), dtype=jnp.float32)
    out = jax.block_until_ready(layer_normalization(x, alpha, beta, eps))
    ref = _ref_layernorm(x, alpha, beta, eps)
    assert jnp.allclose(out, ref, atol=5e-3, rtol=5e-3), "packed path mismatch"

    # ragged leading dims (exercises wrapper padding / arbitrary R)
    x2 = jax.random.normal(k2, (3, 5, num_features), dtype=jnp.float32)
    out2 = jax.block_until_ready(layer_normalization(x2, alpha, beta, eps))
    ref2 = _ref_layernorm(x2, alpha, beta, eps)
    assert jnp.allclose(out2, ref2, atol=5e-3, rtol=5e-3), "ragged path mismatch"

    # wide-feature path (H multiple of 128 -> no packing, XLU reductions)
    h3 = 128
    a3 = jnp.ones((h3,), dtype=jnp.float32)
    b3 = jnp.ones((h3,), dtype=jnp.float32)
    x3 = jax.random.normal(k3, (2, 8, h3), dtype=jnp.float32)
    out3 = jax.block_until_ready(layer_normalization(x3, a3, b3, eps))
    ref3 = _ref_layernorm(x3, a3, b3, eps)
    assert jnp.allclose(out3, ref3, atol=5e-3, rtol=5e-3), "reduce path mismatch"

    print("KERNEL_OK")
</pallas_src>

<mosaic_0001>
module attributes {stable_mosaic.version = 11 : i64} {
  func.func @_ln_kernel_packed(%arg0: i32, %arg1: memref<128x128xf32, #tpu.memory_space<vmem>>, %arg2: memref<8x128xf32, #tpu.memory_space<vmem>>, %arg3: memref<1x128xf32, #tpu.memory_space<vmem>>, %arg4: memref<1x128xf32, #tpu.memory_space<vmem>>, %arg5: memref<8x128xf32, #tpu.memory_space<vmem>>) attributes {dimension_semantics = [#tpu.dimension_semantics<parallel>], iteration_bounds = array<i64: 1>, scalar_prefetch = 0 : i64, scratch_operands = 0 : i64, tpu.core_type = #tpu.core_type<tc>, window_params = [{pipeline_mode = #tpu.pipeline_mode<synchronous>, transform_indices = @transform_0, window_bounds = array<i64: 128, 128>}, {transform_indices = @transform_1, window_bounds = array<i64: 8, 128>}, {pipeline_mode = #tpu.pipeline_mode<synchronous>, transform_indices = @transform_2, window_bounds = array<i64: 1, 128>}, {pipeline_mode = #tpu.pipeline_mode<synchronous>, transform_indices = @transform_3, window_bounds = array<i64: 1, 128>}, {transform_indices = @transform_4, window_bounds = array<i64: 8, 128>}]} {
    %c0 = arith.constant 0 : index
    %c0_0 = arith.constant 0 : index
    %0 = vector.load %arg2[%c0, %c0_0] : memref<8x128xf32, #tpu.memory_space<vmem>>, vector<8x128xf32>
    %c0_1 = arith.constant 0 : index
    %c0_2 = arith.constant 0 : index
    %1 = vector.load %arg1[%c0_1, %c0_2] : memref<128x128xf32, #tpu.memory_space<vmem>>, vector<128x128xf32>
    %cst = arith.constant dense<0.000000e+00> : vector<8x128xf32>
    %2 = tpu.matmul %0, %1, %cst {dimension_numbers = #tpu.dot_dimension_numbers<[1], [0], [0], [1], [0, 0, 1, 1], [], []>} : vector<8x128xf32>, vector<128x128xf32>, vector<8x128xf32> -> vector<8x128xf32>
    %cst_3 = arith.constant 3.125000e-02 : f32
    %3 = vector.broadcast %cst_3 : f32 to vector<8x128xf32>
    %4 = arith.mulf %2, %3 : vector<8x128xf32>
    %5 = arith.subf %0, %4 : vector<8x128xf32>
    %6 = arith.mulf %5, %5 : vector<8x128xf32>
    %cst_4 = arith.constant dense<0.000000e+00> : vector<8x128xf32>
    %7 = tpu.matmul %6, %1, %cst_4 {dimension_numbers = #tpu.dot_dimension_numbers<[1], [0], [0], [1], [0, 0, 1, 1], [], []>} : vector<8x128xf32>, vector<128x128xf32>, vector<8x128xf32> -> vector<8x128xf32>
    %cst_5 = arith.constant 0.0322580636 : f32
    %8 = vector.broadcast %cst_5 : f32 to vector<8x128xf32>
    %9 = arith.mulf %7, %8 : vector<8x128xf32>
    %10 = math.sqrt %9 : vector<8x128xf32>
    %cst_6 = arith.constant 9.99999997E-7 : f32
    %11 = vector.broadcast %cst_6 : f32 to vector<8x128xf32>
    %12 = arith.addf %10, %11 : vector<8x128xf32>
    %13 = tpu.reciprocal %12 {approx = true} : vector<8x128xf32> -> vector<8x128xf32>
    %c0_7 = arith.constant 0 : index
    %c0_8 = arith.constant 0 : index
    %14 = vector.load %arg3[%c0_7, %c0_8] : memref<1x128xf32, #tpu.memory_space<vmem>>, vector<1x128xf32>
    %c0_9 = arith.constant 0 : index
    %c0_10 = arith.constant 0 : index
    %15 = vector.load %arg4[%c0_9, %c0_10] : memref<1x128xf32, #tpu.memory_space<vmem>>, vector<1x128xf32>
    %16 = arith.mulf %5, %13 : vector<8x128xf32>
    %17 = vector.broadcast %14 : vector<1x128xf32> to vector<8x128xf32>
    %18 = arith.mulf %16, %17 : vector<8x128xf32>
    %19 = vector.broadcast %15 : vector<1x128xf32> to vector<8x128xf32>
    %20 = arith.addf %18, %19 : vector<8x128xf32>
    %c0_11 = arith.constant 0 : index
    %c0_12 = arith.constant 0 : index
    %21 = vector.load %arg5[%c0_11, %c0_12] : memref<8x128xf32, #tpu.memory_space<vmem>>, vector<8x128xf32>
    tpu.vector_store %arg5[%c0_11, %c0_12], %20 {strides = array<i32>} : memref<8x128xf32, #tpu.memory_space<vmem>>, vector<8x128xf32>,
    return
  }
  func.func @transform_0(%arg0: i32) -> (i32, i32) {
    %c0_i32 = arith.constant 0 : i32
    %c0_i32_0 = arith.constant 0 : i32
    %c0_i32_1 = arith.constant 0 : i32
    return %c0_i32, %c0_i32_0 : i32, i32
  }
  func.func @transform_1(%arg0: i32) -> (i32, i32) {
    %c0_i32 = arith.constant 0 : i32
    %c0_i32_0 = arith.constant 0 : i32
    return %arg0, %c0_i32 : i32, i32
  }
  func.func @transform_2(%arg0: i32) -> (i32, i32) {
    %c0_i32 = arith.constant 0 : i32
    %c0_i32_0 = arith.constant 0 : i32
    %c0_i32_1 = arith.constant 0 : i32
    return %c0_i32, %c0_i32_0 : i32, i32
  }
  func.func @transform_3(%arg0: i32) -> (i32, i32) {
    %c0_i32 = arith.constant 0 : i32
    %c0_i32_0 = arith.constant 0 : i32
    %c0_i32_1 = arith.constant 0 : i32
    return %c0_i32, %c0_i32_0 : i32, i32
  }
  func.func @transform_4(%arg0: i32) -> (i32, i32) {
    %c0_i32 = arith.constant 0 : i32
    %c0_i32_0 = arith.constant 0 : i32
    return %arg0, %c0_i32 : i32, i32
  }
}

</mosaic_0001>

<bundles_post_ra>
// kernel: tpu_custom_call.1
= control target key start
LH: loop header
LB: loop body
LE: loop exit
PB: predicated region body
PF: predicated region fallthrough
CT: control target
= control target key end

     0   :  { %9 = vsyncpa [#allocation3], 0  ;;  %s561_s0 = inlined_call_operand.hbm [shape: f32[128,128], index: 0, kind: input, shape index: {}]   ;;  %s562_s1 = inlined_call_operand.hbm [shape: f32[8,128], index: 1, kind: input, shape index: {}]   ;;  %s563_s2 = inlined_call_operand.vmem [shape: f32[1,128], index: 2, kind: input, shape index: {}]   ;;  %s564_s3 = inlined_call_operand.vmem [shape: f32[1,128], index: 3, kind: input, shape index: {}]   ;;  %s565_s4 = inlined_call_operand.hbm [shape: f32[8,128], index: 4, kind: output, shape index: {}]  }
   0x1   :  { %10 = vsyncpa [#allocation6], 0 }
   0x2   :  { %11 = vsyncpa [#allocation4], 0  ;;  %s486_s15 = smov [#allocation2]   ;;  %s414_s19 = scalar_lea.hbm %s561_s0, 2048 }
   0x3   :  { %s17_s16 = sshll.u32 %s486_s15, 4  ;;  %p415_p0 = scmp.ne.s32.totalorder %s561_s0, %s414_s19  ;;  %s18_s16 = int_to_ptr.vmem [resolvable:$true] %s17_s16 }
   0x4   :  { %p418_p1 = scmp.lt.u32.totalorder %s414_s19, %s561_s0 }
   0x6   :  { %p420_p2 = pnand %p418_p1, %p415_p0 }
   0x8   :  { %423 = shalt.err (!%p420_p2)
}
   0x9   :  { %s424_s24 = scalar_lea.vmem %s18_s16, 2048  ;;  %p429_p4 = scmp.lt.s32.totalorder %s18_s16, %s18_s16 }
   0xa   :  { %p425_p3 = scmp.ne.s32.totalorder %s18_s16, %s424_s24  ;;  %p430_p5 = scmp.lt.s32.totalorder %s424_s24, %s424_s24 }
   0xc   :  { %p431_p6 = por %p430_p5, %p429_p4 }
   0xe   :  { %p432_p7 = pnand %p431_p6, %p425_p3 }
  0x10   :  { %435 = shalt.err (!%p432_p7)
}
  0x11   :  { %s487_s25 = smov 128   ;;  %s488_s26 = smov 8  }
  0x12   :  { %23 = dma.hbm_to_vmem [thread:$0]  %s561_s0, 2048, %s18_s16, [#allocation3], %s487_s25, %s487_s25, %s488_s26  }
  0x13   :  { %s489_s29 = smov [#allocation5]   ;;  %s436_s7 = scalar_lea.hbm %s562_s1, 128 }
  0x14   :  { %s30_s30 = sshll.u32 %s489_s29, 4  ;;  %p437_p8 = scmp.ne.s32.totalorder %s562_s1, %s436_s7  ;;  %s31_s30 = int_to_ptr.vmem [resolvable:$true] %s30_s30 }
  0x15   :  { %p440_p9 = scmp.lt.u32.totalorder %s436_s7, %s562_s1 }
  0x17   :  { %p442_p10 = pnand %p440_p9, %p437_p8 }
  0x19   :  { %445 = shalt.err (!%p442_p10)
}
  0x1a   :  { %s446_s12 = scalar_lea.vmem %s31_s30, 128  ;;  %p451_p12 = scmp.lt.s32.totalorder %s31_s30, %s31_s30 }
  0x1b   :  { %p447_p11 = scmp.ne.s32.totalorder %s31_s30, %s446_s12  ;;  %p452_p13 = scmp.lt.s32.totalorder %s446_s12, %s446_s12 }
  0x1d   :  { %p453_p0 = por %p452_p13, %p451_p12 }
  0x1f   :  { %p454_p1 = pnand %p453_p0, %p447_p11 }
  0x21   :  { %457 = shalt.err (!%p454_p1)
}
  0x22   :  { %33 = dma.hbm_to_vmem [thread:$0]  %s562_s1, 128, %s31_s30, [#allocation6]  }
  0x23   :  { %480 = dma.done.wait [#allocation3], 2048  }
  0x24   :  { %481 = vsyncadd [#allocation3], 4294965248 }
  0x25   :  { %482 = dma.done.wait [#allocation6], 128  }
  0x26   :  { %483 = vsyncadd [#allocation6], 4294967168  ;;  %v490_v0 = vmov 0.0|0.0   ;;  %vm491_vm0 = vmmov 0   ;;  %v492_v1 = vmov 0.0   ;;  %v45_v2 = vld [vmem:[#allocation2] sm:$0xff] }
  0x27   :  { %354 = vmatprep.subr.bf16.mxu0 %v490_v0  ;;  %316 = vmatprep.mubr.msk.f32.mxu0 %vm491_vm0, %v492_v1  ;;  %v46_v3 = vld [vmem:[#allocation2 + $0x8] sm:$0xff]  ;;  %v47_v4 = vld [vmem:[#allocation2 + $0x10] sm:$0xff]  ;;  %v48_v6 = vld [vmem:[#allocation2 + $0x18] sm:$0xff]  ;;  %s493_s17 = smov [#allocation7]  }
  0x28   :  { %378 = vmatprep.subr.bf16.mxu1 %v490_v0  ;;  %351 = vmatprep.mubr.msk.f32.mxu1 %vm491_vm0, %v492_v1  ;;  %v355_v5 = vpack.c.bf16 %v46_v3, %v45_v2  ;;  %v358_v7 = vpack.c.bf16 %v48_v6, %v47_v4  ;;  %v49_v8 = vld [vmem:[#allocation2 + $0x20] sm:$0xff]  ;;  %v50_v9 = vld [vmem:[#allocation2 + $0x28] sm:$0xff]  ;;  %v51_v11 = vld [vmem:[#allocation2 + $0x30] sm:$0xff]  ;;  %s238_s18 = sshll.u32 %s493_s17, 4  ;;  %s239_s18 = int_to_ptr.vmem [resolvable:$true] %s238_s18 }
  0x29   :  { %v361_v10 = vpack.c.bf16 %v50_v9, %v49_v8  ;;  %v52_v12 = vld [vmem:[#allocation2 + $0x38] sm:$0xff]  ;;  %v53_v14 = vld [vmem:[#allocation2 + $0x40] sm:$0xff]  ;;  %v54_v15 = vld [vmem:[#allocation2 + $0x48] sm:$0xff]  ;;  %s458_s19 = scalar_lea.vmem %s239_s18, 128  ;;  %p463_p3 = scmp.lt.s32.totalorder %s239_s18, %s239_s18 }
  0x2a   :  { %356 = vmatpush3.bf16.msra.mxu0 %v355_v5  ;;  %380 = vmatpush3.bf16.msra.mxu1 %v355_v5  ;;  %v364_v13 = vpack.c.bf16 %v52_v12, %v51_v11  ;;  %v367_v16 = vpack.c.bf16 %v54_v15, %v53_v14  ;;  %v55_v17 = vld [vmem:[#allocation2 + $0x50] sm:$0xff]  ;;  %v56_v18 = vld [vmem:[#allocation2 + $0x58] sm:$0xff]  ;;  %v57_v20 = vld [vmem:[#allocation2 + $0x60] sm:$0xff]  ;;  %p459_p2 = scmp.ne.s32.totalorder %s239_s18, %s458_s19  ;;  %p464_p4 = scmp.lt.s32.totalorder %s458_s19, %s458_s19 }
  0x2b   :  { %357 = vmatprep.subr.bf16.mxu0 %v490_v0  ;;  %381 = vmatprep.subr.bf16.mxu1 %v490_v0  ;;  %v370_v19 = vpack.c.bf16 %v56_v18, %v55_v17  ;;  %v58_v21 = vld [vmem:[#allocation2 + $0x68] sm:$0xff]  ;;  %v59_v23 = vld [vmem:[#allocation2 + $0x70] sm:$0xff]  ;;  %v60_v24 = vld [vmem:[#allocation2 + $0x78] sm:$0xff] }
  0x2c   :  { %v373_v22 = vpack.c.bf16 %v58_v21, %v57_v20  ;;  %v376_v25 = vpack.c.bf16 %v60_v24, %v59_v23  ;;  %v44_v26 = vld [vmem:[#allocation5] sm:$0xff]  ;;  %p465_p5 = por %p464_p4, %p463_p3 }
  0x2d   :  { %v248_v42 = vld [vmem:[%s563_s2] ss:$0 sm:$0xff] }
  0x2e   :  { %359 = vmatpush3.bf16.msra.mxu0 %v358_v7  ;;  %383 = vmatpush3.bf16.msra.mxu1 %v358_v7  ;;  %v249_v44 = vld [vmem:[%s564_s3] ss:$0 sm:$0xff]  ;;  %p466_p6 = pnand %p465_p5, %p459_p2 }
  0x2f   :  { %360 = vmatprep.subr.bf16.mxu0 %v490_v0  ;;  %384 = vmatprep.subr.bf16.mxu1 %v490_v0 }
  0x32   :  { %362 = vmatpush3.bf16.msra.mxu0 %v361_v10  ;;  %386 = vmatpush3.bf16.msra.mxu1 %v361_v10 }
  0x33   :  { %363 = vmatprep.subr.bf16.mxu0 %v490_v0  ;;  %387 = vmatprep.subr.bf16.mxu1 %v490_v0 }
  0x36   :  { %365 = vmatpush3.bf16.msra.mxu0 %v364_v13  ;;  %389 = vmatpush3.bf16.msra.mxu1 %v364_v13 }
  0x37   :  { %366 = vmatprep.subr.bf16.mxu0 %v490_v0  ;;  %390 = vmatprep.subr.bf16.mxu1 %v490_v0 }
  0x3a   :  { %368 = vmatpush3.bf16.msra.mxu0 %v367_v16  ;;  %392 = vmatpush3.bf16.msra.mxu1 %v367_v16 }
  0x3b   :  { %369 = vmatprep.subr.bf16.mxu0 %v490_v0  ;;  %393 = vmatprep.subr.bf16.mxu1 %v490_v0 }
  0x3e   :  { %371 = vmatpush3.bf16.msra.mxu0 %v370_v19  ;;  %395 = vmatpush3.bf16.msra.mxu1 %v370_v19 }
  0x3f   :  { %372 = vmatprep.subr.bf16.mxu0 %v490_v0  ;;  %396 = vmatprep.subr.bf16.mxu1 %v490_v0 }
  0x42   :  { %374 = vmatpush3.bf16.msra.mxu0 %v373_v22  ;;  %398 = vmatpush3.bf16.msra.mxu1 %v373_v22 }
  0x43   :  { %375 = vmatprep.subr.bf16.mxu0 %v490_v0  ;;  %399 = vmatprep.subr.bf16.mxu1 %v490_v0 }
  0x46   :  { %377 = vmatpush3.bf16.msra.mxu0 %v376_v25  ;;  %401 = vmatpush3.bf16.msra.mxu1 %v376_v25 }
  0x49   :  { %317 = vmatmul.mubr.f32.vlgmr.msra.gmra.mrb[0].mxu0 %v44_v26 }
 0x11c   :  { %v127_v27 = vpop.f32.mrb[0].mxu0 }
 0x11d   :  { %v131_v28 = vmul.f32 0.03125, %v127_v27  ;;  %v318_v29 = vpop.f32.mrb[1].mxu0 }
 0x11f   :  { %v132_v30 = vsub.f32 %v44_v26, %v131_v28 }
 0x121   :  { %v133_v31 = vmul.f32 %v132_v30, %v132_v30 }
 0x123   :  { %352 = vmatmul.mubr.f32.vlgmr.msra.gmra.mrb[0].mxu1 %v133_v31 }
 0x1f6   :  { %v200_v32 = vpop.f32.mrb[0].mxu1 }
 0x1f7   :  { %v204_v33 = vmul.f32 0.032258064, %v200_v32  ;;  %v353_v34 = vpop.f32.mrb[1].mxu1 }
 0x1f9   :  { %410 = vrsqrt.f32 %v204_v33  ;;  %vm207_vm1 = vcmp.eq.f32.partialorder %v204_v33, inf  ;;  %v210_v37 = vand.u32 2147483648, %v204_v33  ;;  %vm209_vm2 = vcmp.eq.f32.partialorder %v204_v33, 0.0 }
 0x203   :  { %v411_v35 = vpop.eup %410 }
 0x204   :  { %v206_v36 = vmul.f32 %v411_v35, %v204_v33 }
 0x206   :  { %v208_v38 = vsel %vm207_vm1, %v204_v33, %v206_v36 }
 0x207   :  { %v211_v39 = vsel %vm209_vm2, %v210_v37, %v208_v38 }
 0x208   :  { %v212_v40 = vadd.f32 1e-06, %v211_v39 }
 0x20a   :  { %412 = vrcp.f32 %v212_v40 }
 0x214   :  { %v413_v41 = vpop.eup %412 }
 0x215   :  { %v216_v43 = vmul.f32 %v413_v41, %v132_v30 }
 0x217   :  { %v223_v45 = vmul.f32 %v248_v42, %v216_v43 }
 0x219   :  { %v230_v46 = vadd.f32 %v249_v44, %v223_v45 }
 0x21b   :  { %231 = vst [vmem:[#allocation7] sm:$0xff] %v230_v46 }
 0x21c   :  { %469 = shalt.err (!%p466_p6)
}
 0x21d   :  { %s470_s21 = scalar_lea.hbm %s565_s4, 128 }
 0x21e   :  { %p471_p7 = scmp.ne.s32.totalorder %s565_s4, %s470_s21  ;;  %p474_p8 = scmp.lt.u32.totalorder %s470_s21, %s565_s4 }
 0x220   :  { %p476_p9 = pnand %p474_p8, %p471_p7 }
 0x222   :  { %479 = shalt.err (!%p476_p9)
}
 0x223   :  { %241 = dma.vmem_to_hbm [thread:$0]  %s239_s18, 128, %s565_s4, [#allocation4]  }
 0x224   :  { %484 = dma.done.wait [#allocation4], 128  }
 0x225   :  { %485 = vsyncadd [#allocation4], 4294967168 }
 0x226   :  { %245 = vsyncpa [#allocation3], 1 }
 0x227   :  { %246 = vsyncpa [#allocation6], 1 }
 0x228   :  { %247 = vsyncpa [#allocation4], 1 }

</bundles_post_ra>
